<compile_context>
chip_gen: v5e
topology: v5e:2x2
jax: 0.10.0
libtpu: 0.0.40
codegen_flags: <defaults>
</compile_context>

<pallas_src>
import functools

import jax
import jax.numpy as jnp
from jax import lax
from jax.experimental import pallas as pl
from jax.experimental.pallas import tpu as pltpu


def _bilstm_fc_kernel(x_ref, wih_f_ref, whh_f_ref, b_f_ref,
                      wih_b_ref, b_b_ref,
                      wfc_f_ref, wfc_b_ref, bfc_ref,
                      out_ref,
                      h_scr, c_scr, xg_scr,
                      *, tc, b_pad, hidden):
    """One grid step = one chunk of `tc` timesteps of the forward recurrence."""
    ci = pl.program_id(0)
    H = hidden
    B = b_pad

    @pl.when(ci == 0)
    def _():
        h_scr[...] = jnp.zeros_like(h_scr)
        c_scr[...] = jnp.zeros_like(c_scr)

    # Hoisted input projection for the whole chunk: one big MXU matmul
    # (bf16 operands, f32 accumulation) + a single bias broadcast.
    xg_scr[...] = (
        jnp.dot(x_ref[...], wih_f_ref[...], preferred_element_type=jnp.float32)
        + b_f_ref[...])

    whh = whh_f_ref[...]  # (H, 4H) bf16, loaded once per chunk

    def step(t, carry):
        h_prev, c_prev = carry
        row = pl.multiple_of(t * B, B)
        gates = xg_scr[pl.ds(row, B), :] + jnp.dot(
            h_prev.astype(whh.dtype), whh, preferred_element_type=jnp.float32)
        i_g = jax.nn.sigmoid(gates[:, 0 * H:1 * H])
        f_g = jax.nn.sigmoid(gates[:, 1 * H:2 * H])
        g_g = jnp.tanh(gates[:, 2 * H:3 * H])
        o_g = jax.nn.sigmoid(gates[:, 3 * H:4 * H])
        c_new = f_g * c_prev + i_g * g_g
        h_new = o_g * jnp.tanh(c_new)
        return h_new, c_new

    h_fwd, c_fin = lax.fori_loop(0, tc, step, (h_scr[...], c_scr[...]),
                                 unroll=min(tc, 8))
    # Persist state across chunks (once per chunk, not per timestep).
    h_scr[...] = h_fwd
    c_scr[...] = c_fin

    @pl.when(ci == pl.num_programs(0) - 1)
    def _():
        # Backward direction: single step on x[:, T-1] from zero state.
        # h_prev = c_prev = 0  =>  no recurrent matmul, f-gate unused.
        x_last = x_ref[pl.ds((tc - 1) * B, B), :]
        gb = (jnp.dot(x_last, wih_b_ref[...],
                      preferred_element_type=jnp.float32) + b_b_ref[...])
        i_b = jax.nn.sigmoid(gb[:, 0 * H:1 * H])
        g_b = jnp.tanh(gb[:, 2 * H:3 * H])
        o_b = jax.nn.sigmoid(gb[:, 3 * H:4 * H])
        h_bwd = o_b * jnp.tanh(i_b * g_b)

        # TODO(synk): nn.Dropout is identity in eval mode; training-mode
        # Bernoulli mask/scale omitted.

        wfc_f = wfc_f_ref[...]
        wfc_b = wfc_b_ref[...]
        logits = (jnp.dot(h_fwd.astype(wfc_f.dtype), wfc_f,
                          preferred_element_type=jnp.float32)
                  + jnp.dot(h_bwd.astype(wfc_b.dtype), wfc_b,
                            preferred_element_type=jnp.float32)
                  + bfc_ref[...])
        out_ref[...] = jax.nn.sigmoid(logits)


def _pick_chunk(t, b_pad, cap=128):
    """Largest divisor of T <= cap; prefer chunks whose row count is 16-aligned
    (bf16 sublane packing) unless the chunk is the whole sequence."""
    best = 1
    for d in range(1, min(t, cap) + 1):
        if t % d == 0 and (d == t or (d * b_pad) % 16 == 0):
            best = d
    if best == 1:
        for d in range(1, min(t, cap) + 1):
            if t % d == 0:
                best = d
    return best


def multilabel_rnn_forward(token_ids, params):
    """Embedding gather + layout (fused XLA producer) + one pipelined pallas_call."""
    emb = params["embedding"]                    # (V, E) f32
    B, T = token_ids.shape
    E = emb.shape[1]
    H = params["whh_f"].shape[0]
    L = params["wfc"].shape[1]

    b_pad = max(8, ((B + 7) // 8) * 8)           # sublane-aligned batch
    l_pad = max(128, ((L + 127) // 128) * 128)   # lane-dense output / FC N-dim
    tc = _pick_chunk(T, b_pad)

    # Pad batch with pad-token rows (sliced away at the end).
    ids = jnp.pad(token_ids, ((0, b_pad - B), (0, 0)))
    # Fused gather -> time-major -> (T*B_pad, E) bf16 slab for the kernel.
    x = jnp.take(emb, ids, axis=0)                         # (B_pad, T, E)
    x = jnp.transpose(x, (1, 0, 2)).reshape(T * b_pad, E).astype(jnp.bfloat16)

    wih_f = params["wih_f"].astype(jnp.bfloat16)           # (E, 4H)
    whh_f = params["whh_f"].astype(jnp.bfloat16)           # (H, 4H)
    wih_b = params["wih_b"].astype(jnp.bfloat16)           # (E, 4H)
    b_f = params["b_f"].astype(jnp.float32)                # (1, 4H)
    b_b = params["b_b"].astype(jnp.float32)                # (1, 4H)
    # whh_b is mathematically unused (zero initial state for the single
    # backward step), so it is not passed to the kernel.

    wfc_pad = jnp.zeros((2 * H, l_pad), jnp.float32).at[:, :L].set(params["wfc"])
    bfc_pad = jnp.zeros((1, l_pad), jnp.float32).at[:, :L].set(params["bfc"])
    wfc_f = wfc_pad[:H].astype(jnp.bfloat16)               # (H, L_pad)
    wfc_b = wfc_pad[H:].astype(jnp.bfloat16)               # (H, L_pad)

    kernel = functools.partial(_bilstm_fc_kernel, tc=tc, b_pad=b_pad, hidden=H)
    const2 = lambda i: (0, 0)

    out = pl.pallas_call(
        kernel,
        out_shape=jax.ShapeDtypeStruct((b_pad, l_pad), jnp.float32),
        grid=(T // tc,),
        in_specs=[
            pl.BlockSpec((tc * b_pad, E), lambda i: (i, 0)),   # x chunk (pipelined)
            pl.BlockSpec((E, 4 * H), const2),                  # wih_f (resident)
            pl.BlockSpec((H, 4 * H), const2),                  # whh_f
            pl.BlockSpec((1, 4 * H), const2),                  # b_f
            pl.BlockSpec((E, 4 * H), const2),                  # wih_b
            pl.BlockSpec((1, 4 * H), const2),                  # b_b
            pl.BlockSpec((H, l_pad), const2),                  # wfc (fwd half)
            pl.BlockSpec((H, l_pad), const2),                  # wfc (bwd half)
            pl.BlockSpec((1, l_pad), const2),                  # bfc
        ],
        out_specs=pl.BlockSpec((b_pad, l_pad), const2),
        scratch_shapes=[
            pltpu.VMEM((b_pad, H), jnp.float32),               # h state (cross-chunk)
            pltpu.VMEM((b_pad, H), jnp.float32),               # c state (cross-chunk)
            pltpu.VMEM((tc * b_pad, 4 * H), jnp.float32),      # chunk input projection
        ],
        compiler_params=pltpu.CompilerParams(
            dimension_semantics=("arbitrary",),                # serial recurrence over chunks
            vmem_limit_bytes=32 * 1024 * 1024,                 # v7x-safe scoped budget
        ),
    )(x, wih_f, whh_f, b_f, wih_b, b_b, wfc_f, wfc_b, bfc_pad)

    return out[:B, :L]


def init_params(key, vocab_size, embed_size, hidden_size, num_labels, pad_idx=0):
    """Deterministic synthetic parameters matching nn.LSTM / nn.Linear shapes."""
    ks = jax.random.split(key, 10)
    bound = 1.0 / float(hidden_size) ** 0.5

    def u(k, shape):
        return jax.random.uniform(k, shape, jnp.float32, -bound, bound)

    emb = jax.random.normal(ks[0], (vocab_size, embed_size), jnp.float32)
    emb = emb.at[pad_idx].set(0.0)  # padding_idx row zeroed, as nn.Embedding does

    return dict(
        embedding=emb,
        # weight_ih_l0 / weight_hh_l0 pre-transposed to (E,4H)/(H,4H), gate order [i,f,g,o]
        wih_f=u(ks[1], (embed_size, 4 * hidden_size)),
        whh_f=u(ks[2], (hidden_size, 4 * hidden_size)),
        b_f=u(ks[3], (1, 4 * hidden_size)),      # b_ih + b_hh combined
        wih_b=u(ks[4], (embed_size, 4 * hidden_size)),
        whh_b=u(ks[5], (hidden_size, 4 * hidden_size)),  # present in nn.LSTM; does not affect output
        b_b=u(ks[6], (1, 4 * hidden_size)),
        wfc=u(ks[7], (2 * hidden_size, num_labels)),
        bfc=u(ks[8], (1, num_labels)),
    )


def _reference_forward(token_ids, params):
    """Pure-JAX f32 reference matching the PyTorch module's forward."""
    emb = params["embedding"]
    H = params["whh_f"].shape[0]
    x = jnp.take(emb, token_ids, axis=0)   # (B, T, E)
    B, T, _ = x.shape

    def cell(h, c, x_t, wih, whh, b):
        g = x_t @ wih + h @ whh + b
        i = jax.nn.sigmoid(g[:, :H])
        f = jax.nn.sigmoid(g[:, H:2 * H])
        gg = jnp.tanh(g[:, 2 * H:3 * H])
        o = jax.nn.sigmoid(g[:, 3 * H:])
        c = f * c + i * gg
        return o * jnp.tanh(c), c

    h = jnp.zeros((B, H), jnp.float32)
    c = jnp.zeros((B, H), jnp.float32)
    for t in range(T):
        h, c = cell(h, c, x[:, t], params["wih_f"], params["whh_f"], params["b_f"])
    z = jnp.zeros((B, H), jnp.float32)
    hb, _ = cell(z, z, x[:, T - 1], params["wih_b"], params["whh_b"], params["b_b"])
    logits = jnp.concatenate([h, hb], axis=-1) @ params["wfc"] + params["bfc"]
    return jax.nn.sigmoid(logits)


if __name__ == "__main__":
    key = jax.random.PRNGKey(0)
    B, T = 2, 8                  # batch, sequence length
    V, E, H, L = 50, 32, 32, 4   # vocab, embed dim, hidden size, num_labels

    pkey, dkey = jax.random.split(key)
    params = init_params(pkey, V, E, H, L, pad_idx=0)
    token_ids = jax.random.randint(dkey, (B, T), 0, V, dtype=jnp.int32)

    label_probs = multilabel_rnn_forward(token_ids, params)
    label_probs = jax.block_until_ready(label_probs)

    assert label_probs.shape == (B, L)
    assert bool(jnp.all((label_probs >= 0.0) & (label_probs <= 1.0)))

    ref = jax.block_until_ready(_reference_forward(token_ids, params))
    assert bool(jnp.all(jnp.abs(label_probs - ref) < 5e-2)), "mismatch vs reference"

    print("KERNEL_OK")
</pallas_src>

<mosaic_0001>
module attributes {stable_mosaic.version = 11 : i64} {
  func.func @_bilstm_fc_kernel(%arg0: i32, %arg1: memref<64x32xbf16, #tpu.memory_space<vmem>>, %arg2: memref<32x128xbf16, #tpu.memory_space<vmem>>, %arg3: memref<32x128xbf16, #tpu.memory_space<vmem>>, %arg4: memref<1x128xf32, #tpu.memory_space<vmem>>, %arg5: memref<32x128xbf16, #tpu.memory_space<vmem>>, %arg6: memref<1x128xf32, #tpu.memory_space<vmem>>, %arg7: memref<32x128xbf16, #tpu.memory_space<vmem>>, %arg8: memref<32x128xbf16, #tpu.memory_space<vmem>>, %arg9: memref<1x128xf32, #tpu.memory_space<vmem>>, %arg10: memref<8x128xf32, #tpu.memory_space<vmem>>, %arg11: memref<8x32xf32, #tpu.memory_space<vmem>>, %arg12: memref<8x32xf32, #tpu.memory_space<vmem>>, %arg13: memref<64x128xf32, #tpu.memory_space<vmem>>) attributes {dimension_semantics = [#tpu.dimension_semantics<arbitrary>], iteration_bounds = array<i64: 1>, scalar_prefetch = 0 : i64, scratch_operands = 3 : i64, tpu.core_type = #tpu.core_type<tc>, window_params = [{transform_indices = @transform_0, window_bounds = array<i64: 64, 32>}, {pipeline_mode = #tpu.pipeline_mode<synchronous>, transform_indices = @transform_1, window_bounds = array<i64: 32, 128>}, {pipeline_mode = #tpu.pipeline_mode<synchronous>, transform_indices = @transform_2, window_bounds = array<i64: 32, 128>}, {pipeline_mode = #tpu.pipeline_mode<synchronous>, transform_indices = @transform_3, window_bounds = array<i64: 1, 128>}, {pipeline_mode = #tpu.pipeline_mode<synchronous>, transform_indices = @transform_4, window_bounds = array<i64: 32, 128>}, {pipeline_mode = #tpu.pipeline_mode<synchronous>, transform_indices = @transform_5, window_bounds = array<i64: 1, 128>}, {pipeline_mode = #tpu.pipeline_mode<synchronous>, transform_indices = @transform_6, window_bounds = array<i64: 32, 128>}, {pipeline_mode = #tpu.pipeline_mode<synchronous>, transform_indices = @transform_7, window_bounds = array<i64: 32, 128>}, {pipeline_mode = #tpu.pipeline_mode<synchronous>, transform_indices = @transform_8, window_bounds = array<i64: 1, 128>}, {pipeline_mode = #tpu.pipeline_mode<synchronous>, transform_indices = @transform_9, window_bounds = array<i64: 8, 128>}]} {
    %c0_i32 = arith.constant 0 : i32
    %0 = arith.cmpi eq, %arg0, %c0_i32 : i32
    %1 = arith.extui %0 : i1 to i32
    %c0_i32_0 = arith.constant 0 : i32
    %2 = arith.cmpi ne, %1, %c0_i32_0 : i32
    scf.if %2 {
      %cst_69 = arith.constant 0.000000e+00 : f32
      %274 = vector.broadcast %cst_69 : f32 to vector<8x32xf32>
      %c0_70 = arith.constant 0 : index
      %c0_71 = arith.constant 0 : index
      %275 = vector.load %arg11[%c0_70, %c0_71] : memref<8x32xf32, #tpu.memory_space<vmem>>, vector<8x32xf32>
      tpu.vector_store %arg11[%c0_70, %c0_71], %274 {strides = array<i32>} : memref<8x32xf32, #tpu.memory_space<vmem>>, vector<8x32xf32>,
      %cst_72 = arith.constant 0.000000e+00 : f32
      %276 = vector.broadcast %cst_72 : f32 to vector<8x32xf32>
      %c0_73 = arith.constant 0 : index
      %c0_74 = arith.constant 0 : index
      %277 = vector.load %arg12[%c0_73, %c0_74] : memref<8x32xf32, #tpu.memory_space<vmem>>, vector<8x32xf32>
      tpu.vector_store %arg12[%c0_73, %c0_74], %276 {strides = array<i32>} : memref<8x32xf32, #tpu.memory_space<vmem>>, vector<8x32xf32>,
    } else {
    }
    %c0 = arith.constant 0 : index
    %c0_1 = arith.constant 0 : index
    %3 = vector.load %arg1[%c0, %c0_1] : memref<64x32xbf16, #tpu.memory_space<vmem>>, vector<64x32xbf16>
    %c0_2 = arith.constant 0 : index
    %c0_3 = arith.constant 0 : index
    %4 = vector.load %arg2[%c0_2, %c0_3] : memref<32x128xbf16, #tpu.memory_space<vmem>>, vector<32x128xbf16>
    %cst = arith.constant dense<0.000000e+00> : vector<64x128xf32>
    %5 = tpu.matmul %3, %4, %cst {dimension_numbers = #tpu.dot_dimension_numbers<[1], [0], [0], [1], [0, 0, 1, 1], [], []>} : vector<64x32xbf16>, vector<32x128xbf16>, vector<64x128xf32> -> vector<64x128xf32>
    %c0_4 = arith.constant 0 : index
    %c0_5 = arith.constant 0 : index
    %6 = vector.load %arg4[%c0_4, %c0_5] : memref<1x128xf32, #tpu.memory_space<vmem>>, vector<1x128xf32>
    %7 = vector.broadcast %6 : vector<1x128xf32> to vector<64x128xf32>
    %8 = arith.addf %5, %7 : vector<64x128xf32>
    %c0_6 = arith.constant 0 : index
    %c0_7 = arith.constant 0 : index
    %9 = vector.load %arg13[%c0_6, %c0_7] : memref<64x128xf32, #tpu.memory_space<vmem>>, vector<64x128xf32>
    tpu.vector_store %arg13[%c0_6, %c0_7], %8 {strides = array<i32>} : memref<64x128xf32, #tpu.memory_space<vmem>>, vector<64x128xf32>,
    %c0_8 = arith.constant 0 : index
    %c0_9 = arith.constant 0 : index
    %10 = vector.load %arg3[%c0_8, %c0_9] : memref<32x128xbf16, #tpu.memory_space<vmem>>, vector<32x128xbf16>
    %c0_10 = arith.constant 0 : index
    %c0_11 = arith.constant 0 : index
    %11 = vector.load %arg11[%c0_10, %c0_11] : memref<8x32xf32, #tpu.memory_space<vmem>>, vector<8x32xf32>
    %c0_12 = arith.constant 0 : index
    %c0_13 = arith.constant 0 : index
    %12 = vector.load %arg12[%c0_12, %c0_13] : memref<8x32xf32, #tpu.memory_space<vmem>>, vector<8x32xf32>
    %c0_i32_14 = arith.constant 0 : i32
    %c8_i32 = arith.constant 8 : i32
    %13 = arith.muli %c0_i32_14, %c8_i32 : i32
    %14 = tpu.assume_multiple %13, 8 : i32
    %15 = arith.index_cast %14 : i32 to index
    %c0_15 = arith.constant 0 : index
    %16 = vector.load %arg13[%15, %c0_15] : memref<64x128xf32, #tpu.memory_space<vmem>>, vector<8x128xf32>
    %17 = arith.truncf %11 : vector<8x32xf32> to vector<8x32xbf16>
    %cst_16 = arith.constant dense<0.000000e+00> : vector<8x128xf32>
    %18 = tpu.matmul %17, %10, %cst_16 {dimension_numbers = #tpu.dot_dimension_numbers<[1], [0], [0], [1], [0, 0, 1, 1], [], []>} : vector<8x32xbf16>, vector<32x128xbf16>, vector<8x128xf32> -> vector<8x128xf32>
    %19 = arith.addf %16, %18 : vector<8x128xf32>
    %20 = vector.extract_strided_slice %19 {offsets = [0, 0], sizes = [8, 32], strides = [1, 1]} : vector<8x128xf32> to vector<8x32xf32>
    %21 = arith.negf %20 : vector<8x32xf32>
    %22 = math.exp %21 : vector<8x32xf32>
    %cst_17 = arith.constant 1.000000e+00 : f32
    %23 = vector.broadcast %cst_17 : f32 to vector<8x32xf32>
    %24 = arith.addf %23, %22 : vector<8x32xf32>
    %25 = arith.divf %23, %24 : vector<8x32xf32>
    %26 = vector.extract_strided_slice %19 {offsets = [0, 32], sizes = [8, 32], strides = [1, 1]} : vector<8x128xf32> to vector<8x32xf32>
    %27 = arith.negf %26 : vector<8x32xf32>
    %28 = math.exp %27 : vector<8x32xf32>
    %cst_18 = arith.constant 1.000000e+00 : f32
    %29 = vector.broadcast %cst_18 : f32 to vector<8x32xf32>
    %30 = arith.addf %29, %28 : vector<8x32xf32>
    %31 = arith.divf %29, %30 : vector<8x32xf32>
    %32 = vector.extract_strided_slice %19 {offsets = [0, 64], sizes = [8, 32], strides = [1, 1]} : vector<8x128xf32> to vector<8x32xf32>
    %33 = math.tanh %32 : vector<8x32xf32>
    %34 = vector.extract_strided_slice %19 {offsets = [0, 96], sizes = [8, 32], strides = [1, 1]} : vector<8x128xf32> to vector<8x32xf32>
    %35 = arith.negf %34 : vector<8x32xf32>
    %36 = math.exp %35 : vector<8x32xf32>
    %cst_19 = arith.constant 1.000000e+00 : f32
    %37 = vector.broadcast %cst_19 : f32 to vector<8x32xf32>
    %38 = arith.addf %37, %36 : vector<8x32xf32>
    %39 = arith.divf %37, %38 : vector<8x32xf32>
    %40 = arith.mulf %31, %12 : vector<8x32xf32>
    %41 = arith.mulf %25, %33 : vector<8x32xf32>
    %42 = arith.addf %40, %41 : vector<8x32xf32>
    %43 = math.tanh %42 : vector<8x32xf32>
    %44 = arith.mulf %39, %43 : vector<8x32xf32>
    %c1_i32 = arith.constant 1 : i32
    %c8_i32_20 = arith.constant 8 : i32
    %45 = arith.muli %c1_i32, %c8_i32_20 : i32
    %46 = tpu.assume_multiple %45, 8 : i32
    %47 = arith.index_cast %46 : i32 to index
    %c0_21 = arith.constant 0 : index
    %48 = vector.load %arg13[%47, %c0_21] : memref<64x128xf32, #tpu.memory_space<vmem>>, vector<8x128xf32>
    %49 = arith.truncf %44 : vector<8x32xf32> to vector<8x32xbf16>
    %cst_22 = arith.constant dense<0.000000e+00> : vector<8x128xf32>
    %50 = tpu.matmul %49, %10, %cst_22 {dimension_numbers = #tpu.dot_dimension_numbers<[1], [0], [0], [1], [0, 0, 1, 1], [], []>} : vector<8x32xbf16>, vector<32x128xbf16>, vector<8x128xf32> -> vector<8x128xf32>
    %51 = arith.addf %48, %50 : vector<8x128xf32>
    %52 = vector.extract_strided_slice %51 {offsets = [0, 0], sizes = [8, 32], strides = [1, 1]} : vector<8x128xf32> to vector<8x32xf32>
    %53 = arith.negf %52 : vector<8x32xf32>
    %54 = math.exp %53 : vector<8x32xf32>
    %cst_23 = arith.constant 1.000000e+00 : f32
    %55 = vector.broadcast %cst_23 : f32 to vector<8x32xf32>
    %56 = arith.addf %55, %54 : vector<8x32xf32>
    %57 = arith.divf %55, %56 : vector<8x32xf32>
    %58 = vector.extract_strided_slice %51 {offsets = [0, 32], sizes = [8, 32], strides = [1, 1]} : vector<8x128xf32> to vector<8x32xf32>
    %59 = arith.negf %58 : vector<8x32xf32>
    %60 = math.exp %59 : vector<8x32xf32>
    %cst_24 = arith.constant 1.000000e+00 : f32
    %61 = vector.broadcast %cst_24 : f32 to vector<8x32xf32>
    %62 = arith.addf %61, %60 : vector<8x32xf32>
    %63 = arith.divf %61, %62 : vector<8x32xf32>
    %64 = vector.extract_strided_slice %51 {offsets = [0, 64], sizes = [8, 32], strides = [1, 1]} : vector<8x128xf32> to vector<8x32xf32>
    %65 = math.tanh %64 : vector<8x32xf32>
    %66 = vector.extract_strided_slice %51 {offsets = [0, 96], sizes = [8, 32], strides = [1, 1]} : vector<8x128xf32> to vector<8x32xf32>
    %67 = arith.negf %66 : vector<8x32xf32>
    %68 = math.exp %67 : vector<8x32xf32>
    %cst_25 = arith.constant 1.000000e+00 : f32
    %69 = vector.broadcast %cst_25 : f32 to vector<8x32xf32>
    %70 = arith.addf %69, %68 : vector<8x32xf32>
    %71 = arith.divf %69, %70 : vector<8x32xf32>
    %72 = arith.mulf %63, %42 : vector<8x32xf32>
    %73 = arith.mulf %57, %65 : vector<8x32xf32>
    %74 = arith.addf %72, %73 : vector<8x32xf32>
    %75 = math.tanh %74 : vector<8x32xf32>
    %76 = arith.mulf %71, %75 : vector<8x32xf32>
    %c2_i32 = arith.constant 2 : i32
    %c8_i32_26 = arith.constant 8 : i32
    %77 = arith.muli %c2_i32, %c8_i32_26 : i32
    %78 = tpu.assume_multiple %77, 8 : i32
    %79 = arith.index_cast %78 : i32 to index
    %c0_27 = arith.constant 0 : index
    %80 = vector.load %arg13[%79, %c0_27] : memref<64x128xf32, #tpu.memory_space<vmem>>, vector<8x128xf32>
    %81 = arith.truncf %76 : vector<8x32xf32> to vector<8x32xbf16>
    %cst_28 = arith.constant dense<0.000000e+00> : vector<8x128xf32>
    %82 = tpu.matmul %81, %10, %cst_28 {dimension_numbers = #tpu.dot_dimension_numbers<[1], [0], [0], [1], [0, 0, 1, 1], [], []>} : vector<8x32xbf16>, vector<32x128xbf16>, vector<8x128xf32> -> vector<8x128xf32>
    %83 = arith.addf %80, %82 : vector<8x128xf32>
    %84 = vector.extract_strided_slice %83 {offsets = [0, 0], sizes = [8, 32], strides = [1, 1]} : vector<8x128xf32> to vector<8x32xf32>
    %85 = arith.negf %84 : vector<8x32xf32>
    %86 = math.exp %85 : vector<8x32xf32>
    %cst_29 = arith.constant 1.000000e+00 : f32
    %87 = vector.broadcast %cst_29 : f32 to vector<8x32xf32>
    %88 = arith.addf %87, %86 : vector<8x32xf32>
    %89 = arith.divf %87, %88 : vector<8x32xf32>
    %90 = vector.extract_strided_slice %83 {offsets = [0, 32], sizes = [8, 32], strides = [1, 1]} : vector<8x128xf32> to vector<8x32xf32>
    %91 = arith.negf %90 : vector<8x32xf32>
    %92 = math.exp %91 : vector<8x32xf32>
    %cst_30 = arith.constant 1.000000e+00 : f32
    %93 = vector.broadcast %cst_30 : f32 to vector<8x32xf32>
    %94 = arith.addf %93, %92 : vector<8x32xf32>
    %95 = arith.divf %93, %94 : vector<8x32xf32>
    %96 = vector.extract_strided_slice %83 {offsets = [0, 64], sizes = [8, 32], strides = [1, 1]} : vector<8x128xf32> to vector<8x32xf32>
    %97 = math.tanh %96 : vector<8x32xf32>
    %98 = vector.extract_strided_slice %83 {offsets = [0, 96], sizes = [8, 32], strides = [1, 1]} : vector<8x128xf32> to vector<8x32xf32>
    %99 = arith.negf %98 : vector<8x32xf32>
    %100 = math.exp %99 : vector<8x32xf32>
    %cst_31 = arith.constant 1.000000e+00 : f32
    %101 = vector.broadcast %cst_31 : f32 to vector<8x32xf32>
    %102 = arith.addf %101, %100 : vector<8x32xf32>
    %103 = arith.divf %101, %102 : vector<8x32xf32>
    %104 = arith.mulf %95, %74 : vector<8x32xf32>
    %105 = arith.mulf %89, %97 : vector<8x32xf32>
    %106 = arith.addf %104, %105 : vector<8x32xf32>
    %107 = math.tanh %106 : vector<8x32xf32>
    %108 = arith.mulf %103, %107 : vector<8x32xf32>
    %c3_i32 = arith.constant 3 : i32
    %c8_i32_32 = arith.constant 8 : i32
    %109 = arith.muli %c3_i32, %c8_i32_32 : i32
    %110 = tpu.assume_multiple %109, 8 : i32
    %111 = arith.index_cast %110 : i32 to index
    %c0_33 = arith.constant 0 : index
    %112 = vector.load %arg13[%111, %c0_33] : memref<64x128xf32, #tpu.memory_space<vmem>>, vector<8x128xf32>
    %113 = arith.truncf %108 : vector<8x32xf32> to vector<8x32xbf16>
    %cst_34 = arith.constant dense<0.000000e+00> : vector<8x128xf32>
    %114 = tpu.matmul %113, %10, %cst_34 {dimension_numbers = #tpu.dot_dimension_numbers<[1], [0], [0], [1], [0, 0, 1, 1], [], []>} : vector<8x32xbf16>, vector<32x128xbf16>, vector<8x128xf32> -> vector<8x128xf32>
    %115 = arith.addf %112, %114 : vector<8x128xf32>
    %116 = vector.extract_strided_slice %115 {offsets = [0, 0], sizes = [8, 32], strides = [1, 1]} : vector<8x128xf32> to vector<8x32xf32>
    %117 = arith.negf %116 : vector<8x32xf32>
    %118 = math.exp %117 : vector<8x32xf32>
    %cst_35 = arith.constant 1.000000e+00 : f32
    %119 = vector.broadcast %cst_35 : f32 to vector<8x32xf32>
    %120 = arith.addf %119, %118 : vector<8x32xf32>
    %121 = arith.divf %119, %120 : vector<8x32xf32>
    %122 = vector.extract_strided_slice %115 {offsets = [0, 32], sizes = [8, 32], strides = [1, 1]} : vector<8x128xf32> to vector<8x32xf32>
    %123 = arith.negf %122 : vector<8x32xf32>
    %124 = math.exp %123 : vector<8x32xf32>
    %cst_36 = arith.constant 1.000000e+00 : f32
    %125 = vector.broadcast %cst_36 : f32 to vector<8x32xf32>
    %126 = arith.addf %125, %124 : vector<8x32xf32>
    %127 = arith.divf %125, %126 : vector<8x32xf32>
    %128 = vector.extract_strided_slice %115 {offsets = [0, 64], sizes = [8, 32], strides = [1, 1]} : vector<8x128xf32> to vector<8x32xf32>
    %129 = math.tanh %128 : vector<8x32xf32>
    %130 = vector.extract_strided_slice %115 {offsets = [0, 96], sizes = [8, 32], strides = [1, 1]} : vector<8x128xf32> to vector<8x32xf32>
    %131 = arith.negf %130 : vector<8x32xf32>
    %132 = math.exp %131 : vector<8x32xf32>
    %cst_37 = arith.constant 1.000000e+00 : f32
    %133 = vector.broadcast %cst_37 : f32 to vector<8x32xf32>
    %134 = arith.addf %133, %132 : vector<8x32xf32>
    %135 = arith.divf %133, %134 : vector<8x32xf32>
    %136 = arith.mulf %127, %106 : vector<8x32xf32>
    %137 = arith.mulf %121, %129 : vector<8x32xf32>
    %138 = arith.addf %136, %137 : vector<8x32xf32>
    %139 = math.tanh %138 : vector<8x32xf32>
    %140 = arith.mulf %135, %139 : vector<8x32xf32>
    %c4_i32 = arith.constant 4 : i32
    %c8_i32_38 = arith.constant 8 : i32
    %141 = arith.muli %c4_i32, %c8_i32_38 : i32
    %142 = tpu.assume_multiple %141, 8 : i32
    %143 = arith.index_cast %142 : i32 to index
    %c0_39 = arith.constant 0 : index
    %144 = vector.load %arg13[%143, %c0_39] : memref<64x128xf32, #tpu.memory_space<vmem>>, vector<8x128xf32>
    %145 = arith.truncf %140 : vector<8x32xf32> to vector<8x32xbf16>
    %cst_40 = arith.constant dense<0.000000e+00> : vector<8x128xf32>
    %146 = tpu.matmul %145, %10, %cst_40 {dimension_numbers = #tpu.dot_dimension_numbers<[1], [0], [0], [1], [0, 0, 1, 1], [], []>} : vector<8x32xbf16>, vector<32x128xbf16>, vector<8x128xf32> -> vector<8x128xf32>
    %147 = arith.addf %144, %146 : vector<8x128xf32>
    %148 = vector.extract_strided_slice %147 {offsets = [0, 0], sizes = [8, 32], strides = [1, 1]} : vector<8x128xf32> to vector<8x32xf32>
    %149 = arith.negf %148 : vector<8x32xf32>
    %150 = math.exp %149 : vector<8x32xf32>
    %cst_41 = arith.constant 1.000000e+00 : f32
    %151 = vector.broadcast %cst_41 : f32 to vector<8x32xf32>
    %152 = arith.addf %151, %150 : vector<8x32xf32>
    %153 = arith.divf %151, %152 : vector<8x32xf32>
    %154 = vector.extract_strided_slice %147 {offsets = [0, 32], sizes = [8, 32], strides = [1, 1]} : vector<8x128xf32> to vector<8x32xf32>
    %155 = arith.negf %154 : vector<8x32xf32>
    %156 = math.exp %155 : vector<8x32xf32>
    %cst_42 = arith.constant 1.000000e+00 : f32
    %157 = vector.broadcast %cst_42 : f32 to vector<8x32xf32>
    %158 = arith.addf %157, %156 : vector<8x32xf32>
    %159 = arith.divf %157, %158 : vector<8x32xf32>
    %160 = vector.extract_strided_slice %147 {offsets = [0, 64], sizes = [8, 32], strides = [1, 1]} : vector<8x128xf32> to vector<8x32xf32>
    %161 = math.tanh %160 : vector<8x32xf32>
    %162 = vector.extract_strided_slice %147 {offsets = [0, 96], sizes = [8, 32], strides = [1, 1]} : vector<8x128xf32> to vector<8x32xf32>
    %163 = arith.negf %162 : vector<8x32xf32>
    %164 = math.exp %163 : vector<8x32xf32>
    %cst_43 = arith.constant 1.000000e+00 : f32
    %165 = vector.broadcast %cst_43 : f32 to vector<8x32xf32>
    %166 = arith.addf %165, %164 : vector<8x32xf32>
    %167 = arith.divf %165, %166 : vector<8x32xf32>
    %168 = arith.mulf %159, %138 : vector<8x32xf32>
    %169 = arith.mulf %153, %161 : vector<8x32xf32>
    %170 = arith.addf %168, %169 : vector<8x32xf32>
    %171 = math.tanh %170 : vector<8x32xf32>
    %172 = arith.mulf %167, %171 : vector<8x32xf32>
    %c5_i32 = arith.constant 5 : i32
    %c8_i32_44 = arith.constant 8 : i32
    %173 = arith.muli %c5_i32, %c8_i32_44 : i32
    %174 = tpu.assume_multiple %173, 8 : i32
    %175 = arith.index_cast %174 : i32 to index
    %c0_45 = arith.constant 0 : index
    %176 = vector.load %arg13[%175, %c0_45] : memref<64x128xf32, #tpu.memory_space<vmem>>, vector<8x128xf32>
    %177 = arith.truncf %172 : vector<8x32xf32> to vector<8x32xbf16>
    %cst_46 = arith.constant dense<0.000000e+00> : vector<8x128xf32>
    %178 = tpu.matmul %177, %10, %cst_46 {dimension_numbers = #tpu.dot_dimension_numbers<[1], [0], [0], [1], [0, 0, 1, 1], [], []>} : vector<8x32xbf16>, vector<32x128xbf16>, vector<8x128xf32> -> vector<8x128xf32>
    %179 = arith.addf %176, %178 : vector<8x128xf32>
    %180 = vector.extract_strided_slice %179 {offsets = [0, 0], sizes = [8, 32], strides = [1, 1]} : vector<8x128xf32> to vector<8x32xf32>
    %181 = arith.negf %180 : vector<8x32xf32>
    %182 = math.exp %181 : vector<8x32xf32>
    %cst_47 = arith.constant 1.000000e+00 : f32
    %183 = vector.broadcast %cst_47 : f32 to vector<8x32xf32>
    %184 = arith.addf %183, %182 : vector<8x32xf32>
    %185 = arith.divf %183, %184 : vector<8x32xf32>
    %186 = vector.extract_strided_slice %179 {offsets = [0, 32], sizes = [8, 32], strides = [1, 1]} : vector<8x128xf32> to vector<8x32xf32>
    %187 = arith.negf %186 : vector<8x32xf32>
    %188 = math.exp %187 : vector<8x32xf32>
    %cst_48 = arith.constant 1.000000e+00 : f32
    %189 = vector.broadcast %cst_48 : f32 to vector<8x32xf32>
    %190 = arith.addf %189, %188 : vector<8x32xf32>
    %191 = arith.divf %189, %190 : vector<8x32xf32>
    %192 = vector.extract_strided_slice %179 {offsets = [0, 64], sizes = [8, 32], strides = [1, 1]} : vector<8x128xf32> to vector<8x32xf32>
    %193 = math.tanh %192 : vector<8x32xf32>
    %194 = vector.extract_strided_slice %179 {offsets = [0, 96], sizes = [8, 32], strides = [1, 1]} : vector<8x128xf32> to vector<8x32xf32>
    %195 = arith.negf %194 : vector<8x32xf32>
    %196 = math.exp %195 : vector<8x32xf32>
    %cst_49 = arith.constant 1.000000e+00 : f32
    %197 = vector.broadcast %cst_49 : f32 to vector<8x32xf32>
    %198 = arith.addf %197, %196 : vector<8x32xf32>
    %199 = arith.divf %197, %198 : vector<8x32xf32>
    %200 = arith.mulf %191, %170 : vector<8x32xf32>
    %201 = arith.mulf %185, %193 : vector<8x32xf32>
    %202 = arith.addf %200, %201 : vector<8x32xf32>
    %203 = math.tanh %202 : vector<8x32xf32>
    %204 = arith.mulf %199, %203 : vector<8x32xf32>
    %c6_i32 = arith.constant 6 : i32
    %c8_i32_50 = arith.constant 8 : i32
    %205 = arith.muli %c6_i32, %c8_i32_50 : i32
    %206 = tpu.assume_multiple %205, 8 : i32
    %207 = arith.index_cast %206 : i32 to index
    %c0_51 = arith.constant 0 : index
    %208 = vector.load %arg13[%207, %c0_51] : memref<64x128xf32, #tpu.memory_space<vmem>>, vector<8x128xf32>
    %209 = arith.truncf %204 : vector<8x32xf32> to vector<8x32xbf16>
    %cst_52 = arith.constant dense<0.000000e+00> : vector<8x128xf32>
    %210 = tpu.matmul %209, %10, %cst_52 {dimension_numbers = #tpu.dot_dimension_numbers<[1], [0], [0], [1], [0, 0, 1, 1], [], []>} : vector<8x32xbf16>, vector<32x128xbf16>, vector<8x128xf32> -> vector<8x128xf32>
    %211 = arith.addf %208, %210 : vector<8x128xf32>
    %212 = vector.extract_strided_slice %211 {offsets = [0, 0], sizes = [8, 32], strides = [1, 1]} : vector<8x128xf32> to vector<8x32xf32>
    %213 = arith.negf %212 : vector<8x32xf32>
    %214 = math.exp %213 : vector<8x32xf32>
    %cst_53 = arith.constant 1.000000e+00 : f32
    %215 = vector.broadcast %cst_53 : f32 to vector<8x32xf32>
    %216 = arith.addf %215, %214 : vector<8x32xf32>
    %217 = arith.divf %215, %216 : vector<8x32xf32>
    %218 = vector.extract_strided_slice %211 {offsets = [0, 32], sizes = [8, 32], strides = [1, 1]} : vector<8x128xf32> to vector<8x32xf32>
    %219 = arith.negf %218 : vector<8x32xf32>
    %220 = math.exp %219 : vector<8x32xf32>
    %cst_54 = arith.constant 1.000000e+00 : f32
    %221 = vector.broadcast %cst_54 : f32 to vector<8x32xf32>
    %222 = arith.addf %221, %220 : vector<8x32xf32>
    %223 = arith.divf %221, %222 : vector<8x32xf32>
    %224 = vector.extract_strided_slice %211 {offsets = [0, 64], sizes = [8, 32], strides = [1, 1]} : vector<8x128xf32> to vector<8x32xf32>
    %225 = math.tanh %224 : vector<8x32xf32>
    %226 = vector.extract_strided_slice %211 {offsets = [0, 96], sizes = [8, 32], strides = [1, 1]} : vector<8x128xf32> to vector<8x32xf32>
    %227 = arith.negf %226 : vector<8x32xf32>
    %228 = math.exp %227 : vector<8x32xf32>
    %cst_55 = arith.constant 1.000000e+00 : f32
    %229 = vector.broadcast %cst_55 : f32 to vector<8x32xf32>
    %230 = arith.addf %229, %228 : vector<8x32xf32>
    %231 = arith.divf %229, %230 : vector<8x32xf32>
    %232 = arith.mulf %223, %202 : vector<8x32xf32>
    %233 = arith.mulf %217, %225 : vector<8x32xf32>
    %234 = arith.addf %232, %233 : vector<8x32xf32>
    %235 = math.tanh %234 : vector<8x32xf32>
    %236 = arith.mulf %231, %235 : vector<8x32xf32>
    %c7_i32 = arith.constant 7 : i32
    %c8_i32_56 = arith.constant 8 : i32
    %237 = arith.muli %c7_i32, %c8_i32_56 : i32
    %238 = tpu.assume_multiple %237, 8 : i32
    %239 = arith.index_cast %238 : i32 to index
    %c0_57 = arith.constant 0 : index
    %240 = vector.load %arg13[%239, %c0_57] : memref<64x128xf32, #tpu.memory_space<vmem>>, vector<8x128xf32>
    %241 = arith.truncf %236 : vector<8x32xf32> to vector<8x32xbf16>
    %cst_58 = arith.constant dense<0.000000e+00> : vector<8x128xf32>
    %242 = tpu.matmul %241, %10, %cst_58 {dimension_numbers = #tpu.dot_dimension_numbers<[1], [0], [0], [1], [0, 0, 1, 1], [], []>} : vector<8x32xbf16>, vector<32x128xbf16>, vector<8x128xf32> -> vector<8x128xf32>
    %243 = arith.addf %240, %242 : vector<8x128xf32>
    %244 = vector.extract_strided_slice %243 {offsets = [0, 0], sizes = [8, 32], strides = [1, 1]} : vector<8x128xf32> to vector<8x32xf32>
    %245 = arith.negf %244 : vector<8x32xf32>
    %246 = math.exp %245 : vector<8x32xf32>
    %cst_59 = arith.constant 1.000000e+00 : f32
    %247 = vector.broadcast %cst_59 : f32 to vector<8x32xf32>
    %248 = arith.addf %247, %246 : vector<8x32xf32>
    %249 = arith.divf %247, %248 : vector<8x32xf32>
    %250 = vector.extract_strided_slice %243 {offsets = [0, 32], sizes = [8, 32], strides = [1, 1]} : vector<8x128xf32> to vector<8x32xf32>
    %251 = arith.negf %250 : vector<8x32xf32>
    %252 = math.exp %251 : vector<8x32xf32>
    %cst_60 = arith.constant 1.000000e+00 : f32
    %253 = vector.broadcast %cst_60 : f32 to vector<8x32xf32>
    %254 = arith.addf %253, %252 : vector<8x32xf32>
    %255 = arith.divf %253, %254 : vector<8x32xf32>
    %256 = vector.extract_strided_slice %243 {offsets = [0, 64], sizes = [8, 32], strides = [1, 1]} : vector<8x128xf32> to vector<8x32xf32>
    %257 = math.tanh %256 : vector<8x32xf32>
    %258 = vector.extract_strided_slice %243 {offsets = [0, 96], sizes = [8, 32], strides = [1, 1]} : vector<8x128xf32> to vector<8x32xf32>
    %259 = arith.negf %258 : vector<8x32xf32>
    %260 = math.exp %259 : vector<8x32xf32>
    %cst_61 = arith.constant 1.000000e+00 : f32
    %261 = vector.broadcast %cst_61 : f32 to vector<8x32xf32>
    %262 = arith.addf %261, %260 : vector<8x32xf32>
    %263 = arith.divf %261, %262 : vector<8x32xf32>
    %264 = arith.mulf %255, %234 : vector<8x32xf32>
    %265 = arith.mulf %249, %257 : vector<8x32xf32>
    %266 = arith.addf %264, %265 : vector<8x32xf32>
    %267 = math.tanh %266 : vector<8x32xf32>
    %268 = arith.mulf %263, %267 : vector<8x32xf32>
    %c8_i32_62 = arith.constant 8 : i32
    %c0_63 = arith.constant 0 : index
    %c0_64 = arith.constant 0 : index
    %269 = vector.load %arg11[%c0_63, %c0_64] : memref<8x32xf32, #tpu.memory_space<vmem>>, vector<8x32xf32>
    tpu.vector_store %arg11[%c0_63, %c0_64], %268 {strides = array<i32>} : memref<8x32xf32, #tpu.memory_space<vmem>>, vector<8x32xf32>,
    %c0_65 = arith.constant 0 : index
    %c0_66 = arith.constant 0 : index
    %270 = vector.load %arg12[%c0_65, %c0_66] : memref<8x32xf32, #tpu.memory_space<vmem>>, vector<8x32xf32>
    tpu.vector_store %arg12[%c0_65, %c0_66], %266 {strides = array<i32>} : memref<8x32xf32, #tpu.memory_space<vmem>>, vector<8x32xf32>,
    %c0_i32_67 = arith.constant 0 : i32
    %271 = arith.cmpi eq, %arg0, %c0_i32_67 : i32
    %272 = arith.extui %271 : i1 to i32
    %c0_i32_68 = arith.constant 0 : i32
    %273 = arith.cmpi ne, %272, %c0_i32_68 : i32
    scf.if %273 {
      %c56 = arith.constant 56 : index
      %c0_69 = arith.constant 0 : index
      %274 = vector.load %arg1[%c56, %c0_69] : memref<64x32xbf16, #tpu.memory_space<vmem>>, vector<8x32xbf16>
      %c0_70 = arith.constant 0 : index
      %c0_71 = arith.constant 0 : index
      %275 = vector.load %arg5[%c0_70, %c0_71] : memref<32x128xbf16, #tpu.memory_space<vmem>>, vector<32x128xbf16>
      %cst_72 = arith.constant dense<0.000000e+00> : vector<8x128xf32>
      %276 = tpu.matmul %274, %275, %cst_72 {dimension_numbers = #tpu.dot_dimension_numbers<[1], [0], [0], [1], [0, 0, 1, 1], [], []>} : vector<8x32xbf16>, vector<32x128xbf16>, vector<8x128xf32> -> vector<8x128xf32>
      %c0_73 = arith.constant 0 : index
      %c0_74 = arith.constant 0 : index
      %277 = vector.load %arg6[%c0_73, %c0_74] : memref<1x128xf32, #tpu.memory_space<vmem>>, vector<1x128xf32>
      %278 = vector.broadcast %277 : vector<1x128xf32> to vector<8x128xf32>
      %279 = arith.addf %276, %278 : vector<8x128xf32>
      %280 = vector.extract_strided_slice %279 {offsets = [0, 0], sizes = [8, 32], strides = [1, 1]} : vector<8x128xf32> to vector<8x32xf32>
      %281 = arith.negf %280 : vector<8x32xf32>
      %282 = math.exp %281 : vector<8x32xf32>
      %cst_75 = arith.constant 1.000000e+00 : f32
      %283 = vector.broadcast %cst_75 : f32 to vector<8x32xf32>
      %284 = arith.addf %283, %282 : vector<8x32xf32>
      %285 = arith.divf %283, %284 : vector<8x32xf32>
      %286 = vector.extract_strided_slice %279 {offsets = [0, 64], sizes = [8, 32], strides = [1, 1]} : vector<8x128xf32> to vector<8x32xf32>
      %287 = math.tanh %286 : vector<8x32xf32>
      %288 = vector.extract_strided_slice %279 {offsets = [0, 96], sizes = [8, 32], strides = [1, 1]} : vector<8x128xf32> to vector<8x32xf32>
      %289 = arith.negf %288 : vector<8x32xf32>
      %290 = math.exp %289 : vector<8x32xf32>
      %cst_76 = arith.constant 1.000000e+00 : f32
      %291 = vector.broadcast %cst_76 : f32 to vector<8x32xf32>
      %292 = arith.addf %291, %290 : vector<8x32xf32>
      %293 = arith.divf %291, %292 : vector<8x32xf32>
      %294 = arith.mulf %285, %287 : vector<8x32xf32>
      %295 = math.tanh %294 : vector<8x32xf32>
      %296 = arith.mulf %293, %295 : vector<8x32xf32>
      %c0_77 = arith.constant 0 : index
      %c0_78 = arith.constant 0 : index
      %297 = vector.load %arg7[%c0_77, %c0_78] : memref<32x128xbf16, #tpu.memory_space<vmem>>, vector<32x128xbf16>
      %c0_79 = arith.constant 0 : index
      %c0_80 = arith.constant 0 : index
      %298 = vector.load %arg8[%c0_79, %c0_80] : memref<32x128xbf16, #tpu.memory_space<vmem>>, vector<32x128xbf16>
      %299 = arith.truncf %268 : vector<8x32xf32> to vector<8x32xbf16>
      %cst_81 = arith.constant dense<0.000000e+00> : vector<8x128xf32>
      %300 = tpu.matmul %299, %297, %cst_81 {dimension_numbers = #tpu.dot_dimension_numbers<[1], [0], [0], [1], [0, 0, 1, 1], [], []>} : vector<8x32xbf16>, vector<32x128xbf16>, vector<8x128xf32> -> vector<8x128xf32>
      %301 = arith.truncf %296 : vector<8x32xf32> to vector<8x32xbf16>
      %cst_82 = arith.constant dense<0.000000e+00> : vector<8x128xf32>
      %302 = tpu.matmul %301, %298, %cst_82 {dimension_numbers = #tpu.dot_dimension_numbers<[1], [0], [0], [1], [0, 0, 1, 1], [], []>} : vector<8x32xbf16>, vector<32x128xbf16>, vector<8x128xf32> -> vector<8x128xf32>
      %303 = arith.addf %300, %302 : vector<8x128xf32>
      %c0_83 = arith.constant 0 : index
      %c0_84 = arith.constant 0 : index
      %304 = vector.load %arg9[%c0_83, %c0_84] : memref<1x128xf32, #tpu.memory_space<vmem>>, vector<1x128xf32>
      %305 = vector.broadcast %304 : vector<1x128xf32> to vector<8x128xf32>
      %306 = arith.addf %303, %305 : vector<8x128xf32>
      %307 = arith.negf %306 : vector<8x128xf32>
      %308 = math.exp %307 : vector<8x128xf32>
      %cst_85 = arith.constant 1.000000e+00 : f32
      %309 = vector.broadcast %cst_85 : f32 to vector<8x128xf32>
      %310 = arith.addf %309, %308 : vector<8x128xf32>
      %311 = arith.divf %309, %310 : vector<8x128xf32>
      %c0_86 = arith.constant 0 : index
      %c0_87 = arith.constant 0 : index
      %312 = vector.load %arg10[%c0_86, %c0_87] : memref<8x128xf32, #tpu.memory_space<vmem>>, vector<8x128xf32>
      tpu.vector_store %arg10[%c0_86, %c0_87], %311 {strides = array<i32>} : memref<8x128xf32, #tpu.memory_space<vmem>>, vector<8x128xf32>,
    } else {
    }
    return
  }
  func.func @transform_0(%arg0: i32) -> (i32, i32) {
    %c0_i32 = arith.constant 0 : i32
    %c0_i32_0 = arith.constant 0 : i32
    return %arg0, %c0_i32 : i32, i32
  }
  func.func @transform_1(%arg0: i32) -> (i32, i32) {
    %c0_i32 = arith.constant 0 : i32
    %c0_i32_0 = arith.constant 0 : i32
    %c0_i32_1 = arith.constant 0 : i32
    return %c0_i32, %c0_i32_0 : i32, i32
  }
  func.func @transform_2(%arg0: i32) -> (i32, i32) {
    %c0_i32 = arith.constant 0 : i32
    %c0_i32_0 = arith.constant 0 : i32
    %c0_i32_1 = arith.constant 0 : i32
    return %c0_i32, %c0_i32_0 : i32, i32
  }
  func.func @transform_3(%arg0: i32) -> (i32, i32) {
    %c0_i32 = arith.constant 0 : i32
    %c0_i32_0 = arith.constant 0 : i32
    %c0_i32_1 = arith.constant 0 : i32
    return %c0_i32, %c0_i32_0 : i32, i32
  }
  func.func @transform_4(%arg0: i32) -> (i32, i32) {
    %c0_i32 = arith.constant 0 : i32
    %c0_i32_0 = arith.constant 0 : i32
    %c0_i32_1 = arith.constant 0 : i32
    return %c0_i32, %c0_i32_0 : i32, i32
  }
  func.func @transform_5(%arg0: i32) -> (i32, i32) {
    %c0_i32 = arith.constant 0 : i32
    %c0_i32_0 = arith.constant 0 : i32
    %c0_i32_1 = arith.constant 0 : i32
    return %c0_i32, %c0_i32_0 : i32, i32
  }
  func.func @transform_6(%arg0: i32) -> (i32, i32) {
    %c0_i32 = arith.constant 0 : i32
    %c0_i32_0 = arith.constant 0 : i32
    %c0_i32_1 = arith.constant 0 : i32
    return %c0_i32, %c0_i32_0 : i32, i32
  }
  func.func @transform_7(%arg0: i32) -> (i32, i32) {
    %c0_i32 = arith.constant 0 : i32
    %c0_i32_0 = arith.constant 0 : i32
    %c0_i32_1 = arith.constant 0 : i32
    return %c0_i32, %c0_i32_0 : i32, i32
  }
  func.func @transform_8(%arg0: i32) -> (i32, i32) {
    %c0_i32 = arith.constant 0 : i32
    %c0_i32_0 = arith.constant 0 : i32
    %c0_i32_1 = arith.constant 0 : i32
    return %c0_i32, %c0_i32_0 : i32, i32
  }
  func.func @transform_9(%arg0: i32) -> (i32, i32) {
    %c0_i32 = arith.constant 0 : i32
    %c0_i32_0 = arith.constant 0 : i32
    %c0_i32_1 = arith.constant 0 : i32
    return %c0_i32, %c0_i32_0 : i32, i32
  }
}

</mosaic_0001>

<bundles_post_ra>
// kernel: tpu_custom_call.1
= control target key start
LH: loop header
LB: loop body
LE: loop exit
PB: predicated region body
PF: predicated region fallthrough
CT: control target
= control target key end

     0   :  { %14 = vsyncpa [#allocation6], 0  ;;  %s1327_s0 = inlined_call_operand.vmem [shape: bf16[64,32], index: 0, kind: input, shape index: {}]   ;;  %s1328_s1 = inlined_call_operand.vmem [shape: bf16[32,128], index: 1, kind: input, shape index: {}]   ;;  %s1329_s2 = inlined_call_operand.vmem [shape: bf16[32,128], index: 2, kind: input, shape index: {}]   ;;  %s1330_s3 = inlined_call_operand.vmem [shape: f32[1,128], index: 3, kind: input, shape index: {}]   ;;  %s1331_s4 = inlined_call_operand.vmem [shape: bf16[32,128], index: 4, kind: input, shape index: {}]   ;;  %s1332_s5 = inlined_call_operand.vmem [shape: f32[1,128], index: 5, kind: input, shape index: {}]   ;;  %s1333_s6 = inlined_call_operand.hbm [shape: bf16[32,128], index: 6, kind: input, shape index: {}]   ;;  %s1334_s7 = inlined_call_operand.hbm [shape: bf16[32,128], index: 7, kind: input, shape index: {}]   ;;  %s1335_s8 = inlined_call_operand.vmem [shape: f32[1,128], index: 8, kind: input, shape index: {}]   ;;  %s1336_s9 = inlined_call_operand.hbm [shape: f32[8,128], index: 9, kind: output, shape index: {}]  }
   0x1   :  { %15 = vsyncpa [#allocation9], 0 }
   0x2   :  { %16 = vsyncpa [#allocation7], 0  ;;  %s33_s11 = sshll.u32 %s1333_s6, 4  ;;  %s1125_s12 = smov [#allocation5]   ;;  %s34_s11 = int_to_ptr.hbm [resolvable:$true] %s33_s11 }
   0x3   :  { %s35_s13 = sshll.u32 %s1125_s12, 4  ;;  %s46_s16 = sshll.u32 %s1334_s7, 4  ;;  %s36_s13 = int_to_ptr.vmem [resolvable:$true] %s35_s13  ;;  %s47_s16 = int_to_ptr.hbm [resolvable:$true] %s46_s16 }
   0x4   :  { %s1126_s17 = smov 64   ;;  %s1127_s18 = smov 4  }
   0x5   :  { %41 = dma.hbm_to_vmem [thread:$0]  %s34_s11, 256, %s36_s13, [#allocation6], %s1126_s17, %s1126_s17, %s1127_s18  }
   0x6   :  { %s1128_s19 = smov [#allocation8]  }
   0x7   :  { %s48_s20 = sshll.u32 %s1128_s19, 4  ;;  %s49_s20 = int_to_ptr.vmem [resolvable:$true] %s48_s20 }
   0x8   :  { %54 = dma.hbm_to_vmem [thread:$0]  %s47_s16, 256, %s49_s20, [#allocation9], %s1126_s17, %s1126_s17, %s1127_s18  }
   0x9   :  { %1119 = dma.done.wait [#allocation6], 256  }
   0xa   :  { %1120 = vsyncadd [#allocation6], 4294967040 }
   0xb   :  { %1121 = dma.done.wait [#allocation9], 256  }
   0xc   :  { %1122 = vsyncadd [#allocation9], 4294967040  ;;  %vm70_vm0 = vcmask 261120   ;;  %v1129_v0 = vmov 0.0   ;;  %v951_v1 = vld [vmem:[%s1328_s1 + $0x8] sm:$0xff]  ;;  %v950_v3 = vld [vmem:[%s1328_s1] sm:$0xff] }
   0xd   :  { %71 = vst.msk [vmem:[#allocation2] sm:$0xff] %vm70_vm0, %v1129_v0  ;;  %v1201_v2 = vld [vmem:[%s1329_s2 + $0x8] sm:$0xff]  ;;  %v1209_v4 = vld [vmem:[%s1329_s2] sm:$0xff]  ;;  %140 = vmatpush.bf16.msra.mxu0 %v951_v1  ;;  %s1130_s29 = smov 32   ;;  %s854_s23 = sshll.u32 %s1336_s9, 4  ;;  %s855_s23 = int_to_ptr.hbm [resolvable:$true] %s854_s23 }
   0xe   :  { %72 = vst.msk [vmem:[#allocation3] sm:$0xff] %vm70_vm0, %v1129_v0  ;;  %200 = vmatpush.bf16.msra.mxu1 %v1201_v2  ;;  %264 = vmatpush.bf16.msra.mxu2 %v1201_v2  ;;  %v946_v6 = vld [vmem:[%s1327_s0] sm:$0xff]  ;;  %v947_v1 = vld [vmem:[%s1327_s0 + $0x8] sm:$0xff] }
   0xf   :  { %324 = vmatpush.bf16.msra.mxu3 %v1201_v2  ;;  %v1233_v8 = vld [vmem:[%s1330_s3] ss:$0 sm:$0xff] }
  0x11   :  { %141 = vmatpush.bf16.msra.mxu0 %v950_v3 }
  0x12   :  { %201 = vmatpush.bf16.msra.mxu1 %v1209_v4  ;;  %265 = vmatpush.bf16.msra.mxu2 %v1209_v4 }
  0x13   :  { %325 = vmatpush.bf16.msra.mxu3 %v1209_v4 }
  0x14   :  { %v175_v5 = vld [vmem:[#allocation2] sm:$0xff]  ;;  %889 = vmatmul.msk.bf16.vlgmr.msra.gmra.mxu0 %vm70_vm0, %v946_v6 }
  0x15   :  { %v178_v7 = vpack.c.bf16 %v175_v5, %v175_v5  ;;  %v176_v15 = vld [vmem:[#allocation3] sm:$0xff] }
  0x16   :  { %384 = vmatpush.bf16.msrb.mxu1 %v1201_v2  ;;  %444 = vmatpush.bf16.msrb.mxu2 %v1201_v2 }
  0x17   :  { %901 = vmatmul.msk.bf16.vlgmr.msra.gmra.mxu1 %vm70_vm0, %v178_v7  ;;  %504 = vmatpush.bf16.msrb.mxu3 %v1201_v2 }
  0x1a   :  { %385 = vmatpush.bf16.msrb.mxu1 %v1209_v4  ;;  %445 = vmatpush.bf16.msrb.mxu2 %v1209_v4 }
  0x1b   :  { %505 = vmatpush.bf16.msrb.mxu3 %v1209_v4 }
  0x1e   :  { %564 = vmatpush.bf16.msra.mxu1 %v1201_v2 }
  0x22   :  { %565 = vmatpush.bf16.msra.mxu1 %v1209_v4 }
  0x24   :  { %890 = vmatmul.msk.bf16.gmra.mxu0 %vm70_vm0, %v947_v1 }
  0x91   :  { %v143_v9 = vpop.f32.mrf.mxu0 }
  0x92   :  { %v144_v11 = vadd.f32 %v1233_v8, %v143_v9 }
  0x94   :  { %v203_v10 = vpop.f32.mrf.mxu1 }
  0x95   :  { %v207_v12 = vadd.f32 %v203_v10, %v144_v11 }
  0x97   :  { %971 = vtanh.f32 %v207_v12  ;;  %v902_v16 = vmul.f32 -1.442695, %v207_v12 }
  0x99   :  { %973 = vpow2.f32 %v902_v16  ;;  %v145_v40 = vpop.f32.mrf.mxu0 }
  0x9a   :  { %v146_v41 = vadd.f32 %v1233_v8, %v145_v40 }
  0x9c   :  { %v205_v13 = vpop.f32.mrf.mxu1 }
  0x9d   :  { %v972_v14 = vpop.eup %971 }
  0x9e   :  { %234 = vrot.lane.b32.xlu0 %v972_v14, %s1126_s17 }
  0x9f   :  { %v974_v17 = vpop.eup %973 }
  0xa0   :  { %v211_v18 = vadd.f32 1.0, %v974_v17 }
  0xa1   :  { %v148_v6 = vpop.f32.mrf.mxu0 }
  0xa2   :  { %975 = vrcp.f32 %v211_v18  ;;  %v223_v24 = vand.u32 2147483648, %v211_v18  ;;  %vm217_vm2 = vweird.f32 %v211_v18  ;;  %v221_v25 = vand.u32 2147483647, %v211_v18 }
  0xa3   :  { %v149_v7 = vadd.f32 %v1233_v8, %v148_v6 }
  0xa4   :  { %v224_v27 = vor.u32 1.1754944e-38, %v223_v24  ;;  %vm222_vm4 = vcmp.eq.f32.partialorder %v221_v25, 8.507059e+37 }
  0xa6   :  { %229 = vrot.lane.b32.xlu0 %v176_v15, %s1130_s29 }
  0xa8   :  { %v976_v19 = vpop.eup %975 }
  0xa9   :  { %v213_v20 = vmul.f32 %v976_v19, %v211_v18  ;;  %vm218_vm1 = vweird.f32 %v976_v19 }
  0xaa   :  { %vm219_vm3 = vmor %vm217_vm2, %vm218_vm1 }
  0xab   :  { %v214_v21 = vsub.f32 1.0, %v213_v20 }
  0xad   :  { %v215_v22 = vmul.f32 %v976_v19, %v214_v21 }
  0xaf   :  { %v216_v23 = vadd.f32 %v976_v19, %v215_v22 }
  0xb1   :  { %v220_v26 = vsel %vm219_vm3, %v976_v19, %v216_v23 }
  0xb2   :  { %v225_v29 = vsel %vm222_vm4, %v224_v27, %v220_v26 }
 0x110   :  { %v235_v28 = vpop.permute.xlu0 %234 }
 0x111   :  { %v237_v30 = vmul.f32 %v235_v28, %v225_v29 }
 0x113   :  { %239 = vrot.lane.b32.xlu1 %v237_v30, %s1130_s29 }
 0x118   :  { %v230_v31 = vpop.permute.xlu0 %229 }
 0x119   :  { %v232_v32 = vmul.f32 %v230_v31, %v225_v29 }
 0x185   :  { %v240_v33 = vpop.permute.xlu1 %239 }
 0x186   :  { %v242_v34 = vadd.f32 %v240_v33, %v232_v32 }
 0x188   :  { %977 = vtanh.f32 %v242_v34 }
 0x18e   :  { %v978_v35 = vpop.eup %977 }
 0x18f   :  { %245 = vrot.lane.b32.xlu1 %v978_v35, %s1126_s17 }
 0x201   :  { %v246_v36 = vpop.permute.xlu1 %245 }
 0x202   :  { %v248_v37 = vmul.f32 %v246_v36, %v225_v29  ;;  %v150_v36 = vpop.f32.mrf.mxu0 }
 0x204   :  { %v251_v38 = vpack.c.bf16 %v248_v37, %v248_v37  ;;  %v151_v37 = vadd.f32 %v1233_v8, %v150_v36 }
 0x206   :  { %253 = vrot.lane.b32.xlu2 %v251_v38, %s1130_s29 }
 0x260   :  { %v254_v39 = vpop.permute.xlu2 %253 }
 0x261   :  { %903 = vmatmul.msk.bf16.vlgmr.msra.gmra.mxu2 %vm70_vm0, %v254_v39 }
 0x262   :  { %624 = vmatpush.bf16.msra.mxu2 %v1201_v2 }
 0x266   :  { %625 = vmatpush.bf16.msra.mxu2 %v1209_v4 }
 0x2e4   :  { %v267_v42 = vpop.f32.mrf.mxu2 }
 0x2e5   :  { %v271_v43 = vadd.f32 %v267_v42, %v146_v41 }
 0x2e7   :  { %979 = vtanh.f32 %v271_v43  ;;  %v904_v46 = vmul.f32 -1.442695, %v271_v43 }
 0x2e9   :  { %981 = vpow2.f32 %v904_v46 }
 0x2ec   :  { %v269_v44 = vpop.f32.mrf.mxu2 }
 0x2ed   :  { %v980_v45 = vpop.eup %979 }
 0x2ee   :  { %294 = vrot.lane.b32.xlu2 %v980_v45, %s1126_s17 }
 0x2ef   :  { %v982_v47 = vpop.eup %981 }
 0x2f0   :  { %v275_v48 = vadd.f32 1.0, %v982_v47 }
 0x2f2   :  { %983 = vrcp.f32 %v275_v48  ;;  %v287_v54 = vand.u32 2147483648, %v275_v48  ;;  %vm281_vm6 = vweird.f32 %v275_v48  ;;  %v285_v55 = vand.u32 2147483647, %v275_v48 }
 0x2f4   :  { %v288_v57 = vor.u32 1.1754944e-38, %v287_v54  ;;  %vm286_vm8 = vcmp.eq.f32.partialorder %v285_v55, 8.507059e+37 }
 0x2f8   :  { %v984_v49 = vpop.eup %983 }
 0x2f9   :  { %v277_v50 = vmul.f32 %v984_v49, %v275_v48  ;;  %vm282_vm5 = vweird.f32 %v984_v49 }
 0x2fa   :  { %vm283_vm7 = vmor %vm281_vm6, %vm282_vm5 }
 0x2fb   :  { %v278_v51 = vsub.f32 1.0, %v277_v50 }
 0x2fd   :  { %v279_v52 = vmul.f32 %v984_v49, %v278_v51 }
 0x2ff   :  { %v280_v53 = vadd.f32 %v984_v49, %v279_v52 }
 0x301   :  { %v284_v56 = vsel %vm283_vm7, %v984_v49, %v280_v53 }
 0x302   :  { %v289_v59 = vsel %vm286_vm8, %v288_v57, %v284_v56 }
 0x303   :  { %v292_v61 = vmul.f32 %v289_v59, %v242_v34 }
 0x348   :  { %v295_v58 = vpop.permute.xlu2 %294 }
 0x349   :  { %v297_v60 = vmul.f32 %v295_v58, %v289_v59 }
 0x34b   :  { %299 = vrot.lane.b32.xlu0 %v297_v60, %s1130_s29 }
 0x3bd   :  { %v300_v62 = vpop.permute.xlu0 %299 }
 0x3be   :  { %v302_v63 = vadd.f32 %v300_v62, %v292_v61  ;;  %v948_v61 = vld [vmem:[%s1327_s0 + $0x10] sm:$0xff] }
 0x3bf   :  { %891 = vmatmul.msk.bf16.gmra.mxu0 %vm70_vm0, %v948_v61 }
 0x3c0   :  { %985 = vtanh.f32 %v302_v63 }
 0x3c6   :  { %v986_v0 = vpop.eup %985 }
 0x3c7   :  { %305 = vrot.lane.b32.xlu1 %v986_v0, %s1126_s17 }
 0x439   :  { %v306_v2 = vpop.permute.xlu1 %305 }
 0x43a   :  { %v308_v3 = vmul.f32 %v306_v2, %v289_v59 }
 0x43c   :  { %v311_v4 = vpack.c.bf16 %v308_v3, %v308_v3  ;;  %v153_v2 = vpop.f32.mrf.mxu0 }
 0x43d   :  { %v154_v3 = vadd.f32 %v1233_v8, %v153_v2 }
 0x43e   :  { %313 = vrot.lane.b32.xlu2 %v311_v4, %s1130_s29 }
 0x498   :  { %v314_v5 = vpop.permute.xlu2 %313 }
 0x499   :  { %905 = vmatmul.msk.bf16.vlgmr.msra.gmra.mxu3 %vm70_vm0, %v314_v5 }
 0x51c   :  { %v327_v9 = vpop.f32.mrf.mxu3 }
 0x51d   :  { %v331_v10 = vadd.f32 %v327_v9, %v149_v7 }
 0x51f   :  { %987 = vtanh.f32 %v331_v10  ;;  %v906_v13 = vmul.f32 -1.442695, %v331_v10 }
 0x521   :  { %989 = vpow2.f32 %v906_v13 }
 0x524   :  { %v329_v11 = vpop.f32.mrf.mxu3 }
 0x525   :  { %v988_v12 = vpop.eup %987 }
 0x526   :  { %354 = vrot.lane.b32.xlu0 %v988_v12, %s1126_s17 }
 0x527   :  { %v990_v14 = vpop.eup %989 }
 0x528   :  { %v335_v15 = vadd.f32 1.0, %v990_v14 }
 0x52a   :  { %991 = vrcp.f32 %v335_v15  ;;  %v347_v21 = vand.u32 2147483648, %v335_v15  ;;  %vm341_vm10 = vweird.f32 %v335_v15  ;;  %v345_v22 = vand.u32 2147483647, %v335_v15 }
 0x52c   :  { %v348_v24 = vor.u32 1.1754944e-38, %v347_v21  ;;  %vm346_vm12 = vcmp.eq.f32.partialorder %v345_v22, 8.507059e+37 }
 0x530   :  { %v992_v16 = vpop.eup %991 }
 0x531   :  { %v337_v17 = vmul.f32 %v992_v16, %v335_v15  ;;  %vm342_vm9 = vweird.f32 %v992_v16 }
 0x532   :  { %vm343_vm11 = vmor %vm341_vm10, %vm342_vm9 }
 0x533   :  { %v338_v18 = vsub.f32 1.0, %v337_v17 }
 0x535   :  { %v339_v19 = vmul.f32 %v992_v16, %v338_v18 }
 0x537   :  { %v340_v20 = vadd.f32 %v992_v16, %v339_v19 }
 0x539   :  { %v344_v23 = vsel %vm343_vm11, %v992_v16, %v340_v20 }
 0x53a   :  { %v349_v26 = vsel %vm346_vm12, %v348_v24, %v344_v23 }
 0x53b   :  { %v352_v28 = vmul.f32 %v349_v26, %v302_v63 }
 0x598   :  { %v355_v25 = vpop.permute.xlu0 %354 }
 0x599   :  { %v357_v27 = vmul.f32 %v355_v25, %v349_v26 }
 0x59b   :  { %359 = vrot.lane.b32.xlu1 %v357_v27, %s1130_s29 }
 0x60d   :  { %v360_v29 = vpop.permute.xlu1 %359 }
 0x60e   :  { %v362_v30 = vadd.f32 %v360_v29, %v352_v28 }
 0x610   :  { %993 = vtanh.f32 %v362_v30 }
 0x616   :  { %v994_v31 = vpop.eup %993 }
 0x617   :  { %365 = vrot.lane.b32.xlu2 %v994_v31, %s1126_s17 }
 0x671   :  { %v366_v32 = vpop.permute.xlu2 %365 }
 0x672   :  { %v368_v33 = vmul.f32 %v366_v32, %v349_v26  ;;  %v155_v32 = vpop.f32.mrf.mxu0 }
 0x674   :  { %v371_v34 = vpack.c.bf16 %v368_v33, %v368_v33  ;;  %v156_v33 = vadd.f32 %v1233_v8, %v155_v32 }
 0x676   :  { %373 = vrot.lane.b32.xlu0 %v371_v34, %s1130_s29 }
 0x6e8   :  { %v374_v35 = vpop.permute.xlu0 %373 }
 0x6e9   :  { %907 = vmatmul.msk.bf16.vlgmr.msrb.gmra.mxu1 %vm70_vm0, %v374_v35 }
 0x766   :  { %v387_v38 = vpop.f32.mrf.mxu1 }
 0x767   :  { %v391_v39 = vadd.f32 %v387_v38, %v151_v37 }
 0x769   :  { %995 = vtanh.f32 %v391_v39  ;;  %v908_v42 = vmul.f32 -1.442695, %v391_v39 }
 0x76b   :  { %997 = vpow2.f32 %v908_v42 }
 0x76e   :  { %v389_v40 = vpop.f32.mrf.mxu1 }
 0x76f   :  { %v996_v41 = vpop.eup %995 }
 0x770   :  { %414 = vrot.lane.b32.xlu1 %v996_v41, %s1126_s17 }
 0x771   :  { %v998_v43 = vpop.eup %997 }
 0x772   :  { %v395_v44 = vadd.f32 1.0, %v998_v43 }
 0x774   :  { %999 = vrcp.f32 %v395_v44  ;;  %v407_v50 = vand.u32 2147483648, %v395_v44  ;;  %vm401_vm14 = vweird.f32 %v395_v44  ;;  %v405_v51 = vand.u32 2147483647, %v395_v44 }
 0x776   :  { %v408_v53 = vor.u32 1.1754944e-38, %v407_v50  ;;  %vm406_vm1 = vcmp.eq.f32.partialorder %v405_v51, 8.507059e+37 }
 0x77a   :  { %v1000_v45 = vpop.eup %999 }
 0x77b   :  { %v397_v46 = vmul.f32 %v1000_v45, %v395_v44  ;;  %vm402_vm13 = vweird.f32 %v1000_v45 }
 0x77c   :  { %vm403_vm15 = vmor %vm401_vm14, %vm402_vm13 }
 0x77d   :  { %v398_v47 = vsub.f32 1.0, %v397_v46 }
 0x77f   :  { %v399_v48 = vmul.f32 %v1000_v45, %v398_v47 }
 0x781   :  { %v400_v49 = vadd.f32 %v1000_v45, %v399_v48 }
 0x783   :  { %v404_v52 = vsel %vm403_vm15, %v1000_v45, %v400_v49 }
 0x784   :  { %v409_v55 = vsel %vm406_vm1, %v408_v53, %v404_v52 }
 0x785   :  { %v412_v57 = vmul.f32 %v409_v55, %v362_v30 }
 0x7e2   :  { %v415_v54 = vpop.permute.xlu1 %414 }
 0x7e3   :  { %v417_v56 = vmul.f32 %v415_v54, %v409_v55 }
 0x7e5   :  { %419 = vrot.lane.b32.xlu2 %v417_v56, %s1130_s29 }
 0x83f   :  { %v420_v58 = vpop.permute.xlu2 %419 }
 0x840   :  { %v422_v59 = vadd.f32 %v420_v58, %v412_v57  ;;  %v949_v57 = vld [vmem:[%s1327_s0 + $0x18] sm:$0xff] }
 0x841   :  { %892 = vmatmul.msk.bf16.gmra.mxu0 %vm70_vm0, %v949_v57 }
 0x842   :  { %1001 = vtanh.f32 %v422_v59 }
 0x848   :  { %v1002_v60 = vpop.eup %1001 }
 0x849   :  { %425 = vrot.lane.b32.xlu0 %v1002_v60, %s1126_s17 }
 0x8bb   :  { %v426_v62 = vpop.permute.xlu0 %425 }
 0x8bc   :  { %v428_v63 = vmul.f32 %v426_v62, %v409_v55 }
 0x8be   :  { %v431_v0 = vpack.c.bf16 %v428_v63, %v428_v63  ;;  %v158_v62 = vpop.f32.mrf.mxu0 }
 0x8bf   :  { %v159_v63 = vadd.f32 %v1233_v8, %v158_v62 }
 0x8c0   :  { %433 = vrot.lane.b32.xlu1 %v431_v0, %s1130_s29 }
 0x932   :  { %v434_v1 = vpop.permute.xlu1 %433 }
 0x933   :  { %909 = vmatmul.msk.bf16.vlgmr.msrb.gmra.mxu2 %vm70_vm0, %v434_v1 }
 0x9b6   :  { %v447_v4 = vpop.f32.mrf.mxu2 }
 0x9b7   :  { %v451_v5 = vadd.f32 %v447_v4, %v154_v3 }
 0x9b9   :  { %1003 = vtanh.f32 %v451_v5  ;;  %v910_v9 = vmul.f32 -1.442695, %v451_v5 }
 0x9bb   :  { %1005 = vpow2.f32 %v910_v9 }
 0x9be   :  { %v449_v6 = vpop.f32.mrf.mxu2 }
 0x9bf   :  { %v1004_v7 = vpop.eup %1003 }
 0x9c0   :  { %474 = vrot.lane.b32.xlu2 %v1004_v7, %s1126_s17 }
 0x9c1   :  { %v1006_v10 = vpop.eup %1005 }
 0x9c2   :  { %v455_v11 = vadd.f32 1.0, %v1006_v10 }
 0x9c4   :  { %1007 = vrcp.f32 %v455_v11  ;;  %v467_v17 = vand.u32 2147483648, %v455_v11  ;;  %vm461_vm3 = vweird.f32 %v455_v11  ;;  %v465_v18 = vand.u32 2147483647, %v455_v11 }
 0x9c6   :  { %v468_v20 = vor.u32 1.1754944e-38, %v467_v17  ;;  %vm466_vm5 = vcmp.eq.f32.partialorder %v465_v18, 8.507059e+37 }
 0x9ca   :  { %v1008_v12 = vpop.eup %1007 }
 0x9cb   :  { %v457_v13 = vmul.f32 %v1008_v12, %v455_v11  ;;  %vm462_vm2 = vweird.f32 %v1008_v12 }
 0x9cc   :  { %vm463_vm4 = vmor %vm461_vm3, %vm462_vm2 }
 0x9cd   :  { %v458_v14 = vsub.f32 1.0, %v457_v13 }
 0x9cf   :  { %v459_v15 = vmul.f32 %v1008_v12, %v458_v14 }
 0x9d1   :  { %v460_v16 = vadd.f32 %v1008_v12, %v459_v15 }
 0x9d3   :  { %v464_v19 = vsel %vm463_vm4, %v1008_v12, %v460_v16 }
 0x9d4   :  { %v469_v22 = vsel %vm466_vm5, %v468_v20, %v464_v19 }
 0x9d5   :  { %v472_v24 = vmul.f32 %v469_v22, %v422_v59 }
 0xa1a   :  { %v475_v21 = vpop.permute.xlu2 %474 }
 0xa1b   :  { %v477_v23 = vmul.f32 %v475_v21, %v469_v22 }
 0xa1d   :  { %479 = vrot.lane.b32.xlu0 %v477_v23, %s1130_s29 }
 0xa8f   :  { %v480_v25 = vpop.permute.xlu0 %479 }
 0xa90   :  { %v482_v26 = vadd.f32 %v480_v25, %v472_v24  ;;  %v955_v24 = vld [vmem:[%s1331_s4 + $0x8] sm:$0xff]  ;;  %v954_v25 = vld [vmem:[%s1331_s4] sm:$0xff] }
 0xa91   :  { %712 = vmatpush.bf16.msra.mxu3 %v955_v24 }
 0xa92   :  { %1009 = vtanh.f32 %v482_v26 }
 0xa95   :  { %713 = vmatpush.bf16.msra.mxu3 %v954_v25 }
 0xa98   :  { %v1010_v27 = vpop.eup %1009 }
 0xa99   :  { %485 = vrot.lane.b32.xlu1 %v1010_v27, %s1126_s17 }
 0xb0b   :  { %v486_v28 = vpop.permute.xlu1 %485 }
 0xb0c   :  { %v488_v29 = vmul.f32 %v486_v28, %v469_v22 }
 0xb0e   :  { %v491_v30 = vpack.c.bf16 %v488_v29, %v488_v29 }
 0xb10   :  { %493 = vrot.lane.b32.xlu2 %v491_v30, %s1130_s29  ;;  %v969_v30 = vld [vmem:[%s1332_s5] ss:$0 sm:$0xff] }
 0xb6a   :  { %v494_v31 = vpop.permute.xlu2 %493 }
 0xb6b   :  { %911 = vmatmul.msk.bf16.vlgmr.msrb.gmra.mxu3 %vm70_vm0, %v494_v31 }
 0xbee   :  { %v507_v34 = vpop.f32.mrf.mxu3 }
 0xbef   :  { %v511_v35 = vadd.f32 %v507_v34, %v156_v33 }
 0xbf1   :  { %1011 = vtanh.f32 %v511_v35  ;;  %v912_v38 = vmul.f32 -1.442695, %v511_v35 }
 0xbf3   :  { %1013 = vpow2.f32 %v912_v38 }
 0xbf6   :  { %v509_v36 = vpop.f32.mrf.mxu3 }
 0xbf7   :  { %v1012_v37 = vpop.eup %1011  ;;  %v160_v36 = vpop.f32.mrf.mxu0 }
 0xbf8   :  { %534 = vrot.lane.b32.xlu0 %v1012_v37, %s1126_s17  ;;  %v161_v37 = vadd.f32 %v1233_v8, %v160_v36 }
 0xbf9   :  { %v1014_v39 = vpop.eup %1013 }
 0xbfa   :  { %v515_v40 = vadd.f32 1.0, %v1014_v39 }
 0xbfc   :  { %1015 = vrcp.f32 %v515_v40  ;;  %v527_v46 = vand.u32 2147483648, %v515_v40  ;;  %vm521_vm7 = vweird.f32 %v515_v40  ;;  %v525_v47 = vand.u32 2147483647, %v515_v40 }
 0xbfe   :  { %v528_v49 = vor.u32 1.1754944e-38, %v527_v46  ;;  %vm526_vm9 = vcmp.eq.f32.partialorder %v525_v47, 8.507059e+37 }
 0xc02   :  { %v1016_v41 = vpop.eup %1015 }
 0xc03   :  { %v517_v42 = vmul.f32 %v1016_v41, %v515_v40  ;;  %vm522_vm6 = vweird.f32 %v1016_v41 }
 0xc04   :  { %vm523_vm8 = vmor %vm521_vm7, %vm522_vm6 }
 0xc05   :  { %v518_v43 = vsub.f32 1.0, %v517_v42 }
 0xc07   :  { %v519_v44 = vmul.f32 %v1016_v41, %v518_v43 }
 0xc09   :  { %v520_v45 = vadd.f32 %v1016_v41, %v519_v44 }
 0xc0b   :  { %v524_v48 = vsel %vm523_vm8, %v1016_v41, %v520_v45 }
 0xc0c   :  { %v529_v51 = vsel %vm526_vm9, %v528_v49, %v524_v48 }
 0xc0d   :  { %v532_v53 = vmul.f32 %v529_v51, %v482_v26  ;;  %v682_v26 = vld [vmem:[%s1327_s0 + $0x1c] sm:$0xf]  ;;  %s1131_s0 = smov 96  }
 0xc0e   :  { %925 = vmatmul.msk.bf16.vlgmr.msra.gmra.mxu3 %vm70_vm0, %v682_v26 }
 0xc6a   :  { %v535_v50 = vpop.permute.xlu0 %534 }
 0xc6b   :  { %v537_v52 = vmul.f32 %v535_v50, %v529_v51 }
 0xc6d   :  { %539 = vrot.lane.b32.xlu1 %v537_v52, %s1130_s29 }
 0xc91   :  { %v715_v31 = vpop.f32.mrf.mxu3 }
 0xc92   :  { %v716_v32 = vadd.f32 %v969_v30, %v715_v31 }
 0xc94   :  { %v926_v42 = vmul.f32 -1.442695, %v716_v32 }
 0xc99   :  { %v717_v34 = vpop.f32.mrf.mxu3 }
 0xcdf   :  { %v540_v54 = vpop.permute.xlu1 %539 }
 0xce0   :  { %v542_v55 = vadd.f32 %v540_v54, %v532_v53 }
 0xce2   :  { %1017 = vtanh.f32 %v542_v55 }
 0xce8   :  { %v1018_v56 = vpop.eup %1017 }
 0xce9   :  { %545 = vrot.lane.b32.xlu2 %v1018_v56, %s1126_s17 }
 0xd43   :  { %v546_v58 = vpop.permute.xlu2 %545 }
 0xd44   :  { %v548_v59 = vmul.f32 %v546_v58, %v529_v51 }
 0xd46   :  { %v551_v60 = vpack.c.bf16 %v548_v59, %v548_v59 }
 0xd48   :  { %553 = vrot.lane.b32.xlu0 %v551_v60, %s1130_s29 }
 0xdba   :  { %v554_v61 = vpop.permute.xlu0 %553 }
 0xdbb   :  { %913 = vmatmul.msk.bf16.vlgmr.msra.gmra.mxu1 %vm70_vm0, %v554_v61 }
 0xe38   :  { %v567_v0 = vpop.f32.mrf.mxu1 }
 0xe39   :  { %v571_v1 = vadd.f32 %v567_v0, %v159_v63 }
 0xe3b   :  { %1019 = vtanh.f32 %v571_v1  ;;  %v914_v4 = vmul.f32 -1.442695, %v571_v1 }
 0xe3d   :  { %1021 = vpow2.f32 %v914_v4 }
 0xe40   :  { %v569_v2 = vpop.f32.mrf.mxu1 }
 0xe41   :  { %v1020_v3 = vpop.eup %1019 }
 0xe42   :  { %594 = vrot.lane.b32.xlu1 %v1020_v3, %s1126_s17 }
 0xe43   :  { %v1022_v5 = vpop.eup %1021 }
 0xe44   :  { %v575_v6 = vadd.f32 1.0, %v1022_v5 }
 0xe46   :  { %1023 = vrcp.f32 %v575_v6  ;;  %v587_v13 = vand.u32 2147483648, %v575_v6  ;;  %vm581_vm11 = vweird.f32 %v575_v6  ;;  %v585_v14 = vand.u32 2147483647, %v575_v6 }
 0xe48   :  { %v588_v16 = vor.u32 1.1754944e-38, %v587_v13  ;;  %vm586_vm13 = vcmp.eq.f32.partialorder %v585_v14, 8.507059e+37 }
 0xe4c   :  { %v1024_v7 = vpop.eup %1023 }
 0xe4d   :  { %v577_v9 = vmul.f32 %v1024_v7, %v575_v6  ;;  %vm582_vm10 = vweird.f32 %v1024_v7 }
 0xe4e   :  { %vm583_vm12 = vmor %vm581_vm11, %vm582_vm10 }
 0xe4f   :  { %v578_v10 = vsub.f32 1.0, %v577_v9 }
 0xe51   :  { %v579_v11 = vmul.f32 %v1024_v7, %v578_v10 }
 0xe53   :  { %v580_v12 = vadd.f32 %v1024_v7, %v579_v11 }
 0xe55   :  { %v584_v15 = vsel %vm583_vm12, %v1024_v7, %v580_v12 }
 0xe56   :  { %v589_v18 = vsel %vm586_vm13, %v588_v16, %v584_v15  ;;  %v959_v16 = vld [vmem:[#allocation8 + $0x8] sm:$0xff] }
 0xe57   :  { %v592_v20 = vmul.f32 %v589_v18, %v542_v55  ;;  %784 = vmatpush.bf16.msrb.mxu1 %v959_v16 }
 0xeb4   :  { %v595_v17 = vpop.permute.xlu1 %594 }
 0xeb5   :  { %v597_v19 = vmul.f32 %v595_v17, %v589_v18  ;;  %v958_v17 = vld [vmem:[#allocation8] sm:$0xff] }
 0xeb6   :  { %785 = vmatpush.bf16.msrb.mxu1 %v958_v17 }
 0xeb7   :  { %599 = vrot.lane.b32.xlu2 %v597_v19, %s1130_s29  ;;  %v956_v19 = vld [vmem:[#allocation5] sm:$0xff] }
 0xf11   :  { %v600_v21 = vpop.permute.xlu2 %599 }
 0xf12   :  { %v1289_v22 = vadd.f32 %v600_v21, %v592_v20 }
 0xf14   :  { %1025 = vtanh.f32 %v1289_v22 }
 0xf15   :  { %1027 = vtanh.f32 %v716_v32 }
 0xf1a   :  { %v1026_v23 = vpop.eup %1025 }
 0xf1b   :  { %605 = vrot.lane.b32.xlu0 %v1026_v23, %s1126_s17  ;;  %v1028_v35 = vpop.eup %1027 }
 0xf8d   :  { %v606_v27 = vpop.permute.xlu0 %605 }
 0xf8e   :  { %v608_v28 = vmul.f32 %v606_v27, %v589_v18  ;;  %v957_v18 = vld [vmem:[#allocation5 + $0x8] sm:$0xff] }
 0xf8f   :  { %815 = vmatpush.bf16.msrb.mxu2 %v957_v18 }
 0xf90   :  { %v611_v29 = vpack.c.bf16 %v608_v28, %v608_v28 }
 0xf92   :  { %613 = vrot.lane.b32.xlu1 %v611_v29, %s1130_s29  ;;  %v970_v29 = vld [vmem:[%s1335_s8] ss:$0 sm:$0xff] }
 0xf93   :  { %816 = vmatpush.bf16.msrb.mxu2 %v956_v19 }
 0xf9a   :  { %740 = vrot.lane.b32.xlu1 %v1028_v35, %s1126_s17 }
0x1004   :  { %v614_v33 = vpop.permute.xlu1 %613 }
0x1005   :  { %915 = vmatmul.msk.bf16.vlgmr.msra.gmra.mxu2 %vm70_vm0, %v614_v33 }
0x100c   :  { %v741_v0 = vpop.permute.xlu1 %740 }
0x1088   :  { %v627_v38 = vpop.f32.mrf.mxu2 }
0x1089   :  { %v631_v39 = vadd.f32 %v627_v38, %v161_v37 }
0x108b   :  { %1029 = vtanh.f32 %v631_v39  ;;  %v916_v43 = vmul.f32 -1.442695, %v631_v39 }
0x108c   :  { %1031 = vpow2.f32 %v926_v42 }
0x108d   :  { %1033 = vpow2.f32 %v916_v43 }
0x1090   :  { %v629_v40 = vpop.f32.mrf.mxu2 }
0x1091   :  { %v1030_v41 = vpop.eup %1029 }
0x1092   :  { %654 = vrot.lane.b32.xlu2 %v1030_v41, %s1126_s17  ;;  %v1032_v44 = vpop.eup %1031 }
0x1093   :  { %v722_v45 = vadd.f32 1.0, %v1032_v44  ;;  %v1034_v46 = vpop.eup %1033 }
0x1094   :  { %v635_v47 = vadd.f32 1.0, %v1034_v46 }
0x1095   :  { %1035 = vrcp.f32 %v722_v45  ;;  %vm728_vm14 = vweird.f32 %v722_v45  ;;  %v734_v54 = vand.u32 2147483648, %v722_v45  ;;  %v732_v56 = vand.u32 2147483647, %v722_v45 }
0x1096   :  { %1037 = vrcp.f32 %v635_v47  ;;  %v647_v61 = vand.u32 2147483648, %v635_v47  ;;  %vm641_vm4 = vweird.f32 %v635_v47  ;;  %v645_v62 = vand.u32 2147483647, %v635_v47 }
0x1097   :  { %v735_v58 = vor.u32 1.1754944e-38, %v734_v54  ;;  %vm733_vm2 = vcmp.eq.f32.partialorder %v732_v56, 8.507059e+37 }
0x1098   :  { %v648_v2 = vor.u32 1.1754944e-38, %v647_v61  ;;  %vm646_vm6 = vcmp.eq.f32.partialorder %v645_v62, 8.507059e+37 }
0x109b   :  { %v1036_v48 = vpop.eup %1035 }
0x109c   :  { %v724_v49 = vmul.f32 %v1036_v48, %v722_v45  ;;  %v1038_v8 = vpop.eup %1037  ;;  %vm729_vm15 = vweird.f32 %v1036_v48 }
0x109d   :  { %v637_v51 = vmul.f32 %v1038_v8, %v635_v47  ;;  %vm730_vm1 = vmor %vm728_vm14, %vm729_vm15  ;;  %vm642_vm3 = vweird.f32 %v1038_v8 }
0x109e   :  { %v725_v50 = vsub.f32 1.0, %v724_v49  ;;  %vm643_vm5 = vmor %vm641_vm4, %vm642_vm3 }
0x109f   :  { %v638_v53 = vsub.f32 1.0, %v637_v51 }
0x10a0   :  { %v726_v52 = vmul.f32 %v1036_v48, %v725_v50 }
0x10a1   :  { %v639_v57 = vmul.f32 %v1038_v8, %v638_v53 }
0x10a2   :  { %v727_v55 = vadd.f32 %v1036_v48, %v726_v52 }
0x10a3   :  { %v640_v60 = vadd.f32 %v1038_v8, %v639_v57 }
0x10a4   :  { %v731_v59 = vsel %vm730_vm1, %v1036_v48, %v727_v55 }
0x10a5   :  { %v736_v63 = vsel %vm733_vm2, %v735_v58, %v731_v59  ;;  %v644_v1 = vsel %vm643_vm5, %v1038_v8, %v640_v60 }
0x10a6   :  { %v743_v3 = vmul.f32 %v741_v0, %v736_v63  ;;  %v649_v5 = vsel %vm646_vm6, %v648_v2, %v644_v1 }
0x10a7   :  { %v652_v9 = vmul.f32 %v649_v5, %v1289_v22 }
0x10a8   :  { %1039 = vtanh.f32 %v743_v3 }
0x10ae   :  { %v1040_v7 = vpop.eup %1039 }
0x10ec   :  { %v655_v4 = vpop.permute.xlu2 %654 }
0x10ed   :  { %v657_v6 = vmul.f32 %v655_v4, %v649_v5 }
0x10ef   :  { %659 = vrot.lane.b32.xlu0 %v657_v6, %s1130_s29 }
0x10f7   :  { %746 = vrot.lane.b32.xlu0 %v1040_v7, %s1131_s0 }
0x1161   :  { %v660_v10 = vpop.permute.xlu0 %659 }
0x1162   :  { %v662_v11 = vadd.f32 %v660_v10, %v652_v9 }
0x1164   :  { %1041 = vtanh.f32 %v662_v11 }
0x1169   :  { %v747_v13 = vpop.permute.xlu0 %746 }
0x116a   :  { %v1042_v12 = vpop.eup %1041  ;;  %v749_v14 = vmul.f32 %v747_v13, %v736_v63 }
0x116b   :  { %665 = vrot.lane.b32.xlu2 %v1042_v12, %s1126_s17  ;;  %s1132_s17 = smov [#allocation10]  }
0x116c   :  { %v759_v15 = vpack.c.bf16 %v749_v14, %v749_v14  ;;  %s852_s21 = sshll.u32 %s1132_s17, 4  ;;  %s853_s21 = int_to_ptr.vmem [resolvable:$true] %s852_s21 }
0x1173   :  { %761 = vrot.lane.b32.xlu2 %v759_v15, %s1130_s29 }
0x11c5   :  { %v666_v20 = vpop.permute.xlu2 %665 }
0x11c6   :  { %v668_v21 = vmul.f32 %v666_v20, %v649_v5 }
0x11c8   :  { %v758_v22 = vpack.c.bf16 %v668_v21, %v668_v21  ;;  %670 = vrot.lane.b32.xlu0 %v668_v21, %s1130_s29 }
0x11ca   :  { %792 = vrot.lane.b32.xlu1 %v758_v22, %s1130_s29 }
0x11cd   :  { %v762_v23 = vpop.permute.xlu2 %761 }
0x11ce   :  { %935 = vmatmul.msk.bf16.vlgmr.msrb.gmra.mxu1 %vm70_vm0, %v762_v23 }
0x11d2   :  { %675 = vrot.lane.b32.xlu1 %v662_v11, %s1131_s0 }
0x123a   :  { %v671_v24 = vpop.permute.xlu0 %670 }
0x123b   :  { %673 = vst.msk [vmem:[#allocation2] sm:$0xff] %vm70_vm0, %v671_v24 }
0x123c   :  { %v793_v25 = vpop.permute.xlu1 %792 }
0x123d   :  { %944 = vmatmul.msk.bf16.vlgmr.msrb.gmra.mxu2 %vm70_vm0, %v793_v25 }
0x1244   :  { %v676_v26 = vpop.permute.xlu1 %675 }
0x1245   :  { %678 = vst.msk [vmem:[#allocation3] sm:$0xff] %vm70_vm0, %v676_v26 }
0x124b   :  { %v787_v27 = vpop.f32.mrf.mxu1 }
0x1253   :  { %v789_v28 = vpop.f32.mrf.mxu1 }
0x12c0   :  { %v818_v30 = vpop.f32.mrf.mxu2 }
0x12c1   :  { %v819_v31 = vadd.f32 %v818_v30, %v787_v27 }
0x12c3   :  { %v826_v32 = vadd.f32 %v970_v29, %v819_v31 }
0x12c5   :  { %v945_v33 = vmul.f32 -1.442695, %v826_v32 }
0x12c7   :  { %1043 = vpow2.f32 %v945_v33 }
0x12c8   :  { %v820_v34 = vpop.f32.mrf.mxu2 }
0x12cd   :  { %v1044_v35 = vpop.eup %1043 }
0x12ce   :  { %v830_v36 = vadd.f32 1.0, %v1044_v35 }
0x12d0   :  { %1045 = vrcp.f32 %v830_v36  ;;  %v842_v40 = vand.u32 2147483648, %v830_v36  ;;  %v840_v42 = vand.u32 2147483647, %v830_v36  ;;  %vm836_vm7 = vweird.f32 %v830_v36 }
0x12d2   :  { %v843_v44 = vor.u32 1.1754944e-38, %v842_v40  ;;  %vm841_vm9 = vcmp.eq.f32.partialorder %v840_v42, 8.507059e+37 }
0x12d6   :  { %v1046_v37 = vpop.eup %1045 }
0x12d7   :  { %v832_v38 = vmul.f32 %v1046_v37, %v830_v36  ;;  %vm837_vm0 = vweird.f32 %v1046_v37 }
0x12d8   :  { %vm838_vm8 = vmor %vm836_vm7, %vm837_vm0 }
0x12d9   :  { %v833_v39 = vsub.f32 1.0, %v832_v38 }
0x12db   :  { %v834_v41 = vmul.f32 %v1046_v37, %v833_v39 }
0x12dd   :  { %v835_v43 = vadd.f32 %v1046_v37, %v834_v41 }
0x12df   :  { %v839_v45 = vsel %vm838_vm8, %v1046_v37, %v835_v43 }
0x12e0   :  { %v844_v46 = vsel %vm841_vm9, %v843_v44, %v839_v45 }
0x12e1   :  { %846 = vst [vmem:[#allocation10] sm:$0xff] %v844_v46 }
0x12e2   :  { %857 = dma.vmem_to_hbm [thread:$0]  %s853_s21, 128, %s855_s23, [#allocation7]  }
0x12e3   :  { %1123 = dma.done.wait [#allocation7], 128  }
0x12e4   :  { %1124 = vsyncadd [#allocation7], 4294967168 }
0x12e5   :  { %862 = vsyncpa [#allocation6], 1 }
0x12e6   :  { %863 = vsyncpa [#allocation9], 1 }
0x12e7   :  { %864 = vsyncpa [#allocation7], 1 }

</bundles_post_ra>
